<compile_context>
chip_gen: v5e
topology: v5e:2x2
jax: 0.10.0
libtpu: 0.0.40
codegen_flags: <defaults>
</compile_context>

<pallas_src>
import jax
import jax.numpy as jnp
from jax.experimental import pallas as pl
from jax.experimental.pallas import tpu as pltpu

INPUT_SIZE = 20
H0 = 30
H1 = 40
OUTPUT_SIZE = 100

# Lane-dense padded hidden widths (last dim of every intermediate = 128).
H0_PAD = 128
H1_PAD = 128

TB_MAX = 4096  # max batch rows per grid step (multiple of 8 sublanes)


def _round_up(n, m):
    return ((n + m - 1) // m) * m


def mlp_kernel(x_ref, w0_ref, b0_ref, w1_ref, b1_ref, w2_ref, b2_ref, o_ref):
    # Fused 3-layer MLP on one batch tile. x arrives f32 and is cast to bf16
    # in-registers (cheap VPU op hidden under the DMA); matmuls accumulate in
    # f32 on the MXU; bias-add / ReLU epilogues stay f32; final store is the
    # true 100-wide f32 output.
    x = x_ref[...].astype(jnp.bfloat16)
    h0 = jnp.dot(x, w0_ref[...], preferred_element_type=jnp.float32) + b0_ref[...]
    h0 = jnp.maximum(h0, 0.0).astype(jnp.bfloat16)
    h1 = jnp.dot(h0, w1_ref[...], preferred_element_type=jnp.float32) + b1_ref[...]
    h1 = jnp.maximum(h1, 0.0).astype(jnp.bfloat16)
    out = jnp.dot(h1, w2_ref[...], preferred_element_type=jnp.float32) + b2_ref[...]
    o_ref[...] = out.astype(o_ref.dtype)


def _pad_params(p):
    """Zero-pad hidden dims to 128 lanes; weights -> bf16, biases stay f32.
    The last layer keeps its true 100-wide output so the kernel can store the
    final result directly (no padded output slab / wrapper slice)."""
    w0 = jnp.pad(p["w0"], ((0, 0), (0, H0_PAD - H0))).astype(jnp.bfloat16)
    b0 = jnp.pad(p["b0"], ((0, 0), (0, H0_PAD - H0))).astype(jnp.float32)
    w1 = jnp.pad(p["w1"], ((0, H0_PAD - H0), (0, H1_PAD - H1))).astype(jnp.bfloat16)
    b1 = jnp.pad(p["b1"], ((0, 0), (0, H1_PAD - H1))).astype(jnp.float32)
    w2 = jnp.pad(p["w2"], ((0, H1_PAD - H1), (0, 0))).astype(jnp.bfloat16)
    b2 = p["b2"].astype(jnp.float32)
    return w0, b0, w1, b1, w2, b2


def foo_forward(x, params):
    """x: [B, INPUT_SIZE] float32. params: dict of w0,b0,w1,b1,w2,b2 (f32, (in,out))."""
    B = x.shape[0]
    w0, b0, w1, b1, w2, b2 = _pad_params(params)

    # Batch tile: as large as TB_MAX, but (a) at least 8 sublanes and (b)
    # capped at ~half the batch so the grid keeps >=2 steps when possible
    # (v7x megacore sharding). No batch padding: the ragged last tile is
    # handled by the cdiv grid (OOB output rows are masked on store).
    TB = max(8, min(TB_MAX, _round_up(pl.cdiv(B, 2), 8)))
    grid = (pl.cdiv(B, TB),)

    flops = 2 * B * (INPUT_SIZE * H0_PAD + H0_PAD * H1_PAD + H1_PAD * OUTPUT_SIZE)
    bytes_accessed = (
        B * INPUT_SIZE * 4                         # x (f32)
        + B * OUTPUT_SIZE * 4                      # out (f32)
        + (w0.size + w1.size + w2.size) * 2        # weights (bf16)
        + (b0.size + b1.size + b2.size) * 4        # biases (f32)
    )

    const = lambda shape: pl.BlockSpec(shape, lambda i: (0, 0))

    out = pl.pallas_call(
        mlp_kernel,
        out_shape=jax.ShapeDtypeStruct((B, OUTPUT_SIZE), jnp.float32),
        grid=grid,
        in_specs=[
            pl.BlockSpec((TB, INPUT_SIZE), lambda i: (i, 0)),
            const(w0.shape), const(b0.shape),
            const(w1.shape), const(b1.shape),
            const(w2.shape), const(b2.shape),
        ],
        out_specs=pl.BlockSpec((TB, OUTPUT_SIZE), lambda i: (i, 0)),
        compiler_params=pltpu.CompilerParams(
            dimension_semantics=("parallel",),
            vmem_limit_bytes=48 * 1024 * 1024,
        ),
        cost_estimate=pl.CostEstimate(
            flops=flops, transcendentals=0, bytes_accessed=bytes_accessed),
    )(x, w0, b0, w1, b1, w2, b2)

    return out


def init_params(key):
    """Deterministic init mirroring nn.Linear shapes (stored as (in, out))."""
    ks = jax.random.split(key, 6)

    def linear(kw, kb, fan_in, fan_out):
        bound = 1.0 / jnp.sqrt(fan_in)
        w = jax.random.uniform(kw, (fan_in, fan_out), jnp.float32, -bound, bound)
        b = jax.random.uniform(kb, (1, fan_out), jnp.float32, -bound, bound)
        return w, b

    w0, b0 = linear(ks[0], ks[1], INPUT_SIZE, H0)
    w1, b1 = linear(ks[2], ks[3], H0, H1)
    w2, b2 = linear(ks[4], ks[5], H1, OUTPUT_SIZE)
    return {"w0": w0, "b0": b0, "w1": w1, "b1": b1, "w2": w2, "b2": b2}


def foo_reference_f32(x, p):
    h0 = jnp.maximum(x @ p["w0"] + p["b0"], 0.0)
    h1 = jnp.maximum(h0 @ p["w1"] + p["b1"], 0.0)
    return h1 @ p["w2"] + p["b2"]


def foo_reference_bf16(x, p):
    """Mirrors the kernel's precision path (bf16 operands, f32 accumulate)."""
    bf = jnp.bfloat16
    h0 = jnp.dot(x.astype(bf), p["w0"].astype(bf),
                 preferred_element_type=jnp.float32) + p["b0"]
    h0 = jnp.maximum(h0, 0.0).astype(bf)
    h1 = jnp.dot(h0, p["w1"].astype(bf),
                 preferred_element_type=jnp.float32) + p["b1"]
    h1 = jnp.maximum(h1, 0.0).astype(bf)
    return jnp.dot(h1, p["w2"].astype(bf),
                   preferred_element_type=jnp.float32) + p["b2"]


if __name__ == "__main__":
    key = jax.random.PRNGKey(0)
    kx, kp = jax.random.split(key)

    B = 8
    x = jax.random.normal(kx, (B, INPUT_SIZE), jnp.float32)
    params = init_params(kp)

    out = jax.block_until_ready(foo_forward(x, params))
    assert out.shape == (B, OUTPUT_SIZE), out.shape

    # Tight check against a reference using the same bf16/f32 precision path.
    ref_bf16 = foo_reference_bf16(x, params)
    assert jnp.allclose(out, ref_bf16, atol=2e-3, rtol=2e-3), "mismatch vs bf16 reference"

    # Looser check against the pure-f32 module semantics.
    ref_f32 = foo_reference_f32(x, params)
    assert jnp.allclose(out, ref_f32, atol=5e-2, rtol=5e-2), "mismatch vs f32 reference"

    print("KERNEL_OK")
</pallas_src>

<mosaic_0001>
module attributes {stable_mosaic.version = 11 : i64} {
  func.func @mlp_kernel(%arg0: i32, %arg1: memref<8x20xf32, #tpu.memory_space<vmem>>, %arg2: memref<20x128xbf16, #tpu.memory_space<vmem>>, %arg3: memref<1x128xf32, #tpu.memory_space<vmem>>, %arg4: memref<128x128xbf16, #tpu.memory_space<vmem>>, %arg5: memref<1x128xf32, #tpu.memory_space<vmem>>, %arg6: memref<128x100xbf16, #tpu.memory_space<vmem>>, %arg7: memref<1x100xf32, #tpu.memory_space<vmem>>, %arg8: memref<8x100xf32, #tpu.memory_space<vmem>>) attributes {dimension_semantics = [#tpu.dimension_semantics<parallel>], iteration_bounds = array<i64: 1>, scalar_prefetch = 0 : i64, scratch_operands = 0 : i64, tpu.core_type = #tpu.core_type<tc>, window_params = [{transform_indices = @transform_0, window_bounds = array<i64: 8, 20>}, {pipeline_mode = #tpu.pipeline_mode<synchronous>, transform_indices = @transform_1, window_bounds = array<i64: 20, 128>}, {pipeline_mode = #tpu.pipeline_mode<synchronous>, transform_indices = @transform_2, window_bounds = array<i64: 1, 128>}, {pipeline_mode = #tpu.pipeline_mode<synchronous>, transform_indices = @transform_3, window_bounds = array<i64: 128, 128>}, {pipeline_mode = #tpu.pipeline_mode<synchronous>, transform_indices = @transform_4, window_bounds = array<i64: 1, 128>}, {pipeline_mode = #tpu.pipeline_mode<synchronous>, transform_indices = @transform_5, window_bounds = array<i64: 128, 100>}, {pipeline_mode = #tpu.pipeline_mode<synchronous>, transform_indices = @transform_6, window_bounds = array<i64: 1, 100>}, {transform_indices = @transform_7, window_bounds = array<i64: 8, 100>}]} {
    %c0 = arith.constant 0 : index
    %c0_0 = arith.constant 0 : index
    %0 = vector.load %arg1[%c0, %c0_0] : memref<8x20xf32, #tpu.memory_space<vmem>>, vector<8x20xf32>
    %1 = arith.truncf %0 : vector<8x20xf32> to vector<8x20xbf16>
    %c0_1 = arith.constant 0 : index
    %c0_2 = arith.constant 0 : index
    %2 = vector.load %arg2[%c0_1, %c0_2] : memref<20x128xbf16, #tpu.memory_space<vmem>>, vector<20x128xbf16>
    %cst = arith.constant dense<0.000000e+00> : vector<8x128xf32>
    %3 = tpu.matmul %1, %2, %cst {dimension_numbers = #tpu.dot_dimension_numbers<[1], [0], [0], [1], [0, 0, 1, 1], [], []>} : vector<8x20xbf16>, vector<20x128xbf16>, vector<8x128xf32> -> vector<8x128xf32>
    %c0_3 = arith.constant 0 : index
    %c0_4 = arith.constant 0 : index
    %4 = vector.load %arg3[%c0_3, %c0_4] : memref<1x128xf32, #tpu.memory_space<vmem>>, vector<1x128xf32>
    %5 = vector.broadcast %4 : vector<1x128xf32> to vector<8x128xf32>
    %6 = arith.addf %3, %5 : vector<8x128xf32>
    %cst_5 = arith.constant 0.000000e+00 : f32
    %7 = vector.broadcast %cst_5 : f32 to vector<8x128xf32>
    %8 = arith.maximumf %6, %7 : vector<8x128xf32>
    %9 = arith.truncf %8 : vector<8x128xf32> to vector<8x128xbf16>
    %c0_6 = arith.constant 0 : index
    %c0_7 = arith.constant 0 : index
    %10 = vector.load %arg4[%c0_6, %c0_7] : memref<128x128xbf16, #tpu.memory_space<vmem>>, vector<128x128xbf16>
    %cst_8 = arith.constant dense<0.000000e+00> : vector<8x128xf32>
    %11 = tpu.matmul %9, %10, %cst_8 {dimension_numbers = #tpu.dot_dimension_numbers<[1], [0], [0], [1], [0, 0, 1, 1], [], []>} : vector<8x128xbf16>, vector<128x128xbf16>, vector<8x128xf32> -> vector<8x128xf32>
    %c0_9 = arith.constant 0 : index
    %c0_10 = arith.constant 0 : index
    %12 = vector.load %arg5[%c0_9, %c0_10] : memref<1x128xf32, #tpu.memory_space<vmem>>, vector<1x128xf32>
    %13 = vector.broadcast %12 : vector<1x128xf32> to vector<8x128xf32>
    %14 = arith.addf %11, %13 : vector<8x128xf32>
    %cst_11 = arith.constant 0.000000e+00 : f32
    %15 = vector.broadcast %cst_11 : f32 to vector<8x128xf32>
    %16 = arith.maximumf %14, %15 : vector<8x128xf32>
    %17 = arith.truncf %16 : vector<8x128xf32> to vector<8x128xbf16>
    %c0_12 = arith.constant 0 : index
    %c0_13 = arith.constant 0 : index
    %18 = vector.load %arg6[%c0_12, %c0_13] : memref<128x100xbf16, #tpu.memory_space<vmem>>, vector<128x100xbf16>
    %cst_14 = arith.constant dense<0.000000e+00> : vector<8x100xf32>
    %19 = tpu.matmul %17, %18, %cst_14 {dimension_numbers = #tpu.dot_dimension_numbers<[1], [0], [0], [1], [0, 0, 1, 1], [], []>} : vector<8x128xbf16>, vector<128x100xbf16>, vector<8x100xf32> -> vector<8x100xf32>
    %c0_15 = arith.constant 0 : index
    %c0_16 = arith.constant 0 : index
    %20 = vector.load %arg7[%c0_15, %c0_16] : memref<1x100xf32, #tpu.memory_space<vmem>>, vector<1x100xf32>
    %21 = vector.broadcast %20 : vector<1x100xf32> to vector<8x100xf32>
    %22 = arith.addf %19, %21 : vector<8x100xf32>
    %c0_17 = arith.constant 0 : index
    %c0_18 = arith.constant 0 : index
    %23 = vector.load %arg8[%c0_17, %c0_18] : memref<8x100xf32, #tpu.memory_space<vmem>>, vector<8x100xf32>
    tpu.vector_store %arg8[%c0_17, %c0_18], %22 {strides = array<i32>} : memref<8x100xf32, #tpu.memory_space<vmem>>, vector<8x100xf32>,
    return
  }
  func.func @transform_0(%arg0: i32) -> (i32, i32) {
    %c0_i32 = arith.constant 0 : i32
    %c0_i32_0 = arith.constant 0 : i32
    return %arg0, %c0_i32 : i32, i32
  }
  func.func @transform_1(%arg0: i32) -> (i32, i32) {
    %c0_i32 = arith.constant 0 : i32
    %c0_i32_0 = arith.constant 0 : i32
    %c0_i32_1 = arith.constant 0 : i32
    return %c0_i32, %c0_i32_0 : i32, i32
  }
  func.func @transform_2(%arg0: i32) -> (i32, i32) {
    %c0_i32 = arith.constant 0 : i32
    %c0_i32_0 = arith.constant 0 : i32
    %c0_i32_1 = arith.constant 0 : i32
    return %c0_i32, %c0_i32_0 : i32, i32
  }
  func.func @transform_3(%arg0: i32) -> (i32, i32) {
    %c0_i32 = arith.constant 0 : i32
    %c0_i32_0 = arith.constant 0 : i32
    %c0_i32_1 = arith.constant 0 : i32
    return %c0_i32, %c0_i32_0 : i32, i32
  }
  func.func @transform_4(%arg0: i32) -> (i32, i32) {
    %c0_i32 = arith.constant 0 : i32
    %c0_i32_0 = arith.constant 0 : i32
    %c0_i32_1 = arith.constant 0 : i32
    return %c0_i32, %c0_i32_0 : i32, i32
  }
  func.func @transform_5(%arg0: i32) -> (i32, i32) {
    %c0_i32 = arith.constant 0 : i32
    %c0_i32_0 = arith.constant 0 : i32
    %c0_i32_1 = arith.constant 0 : i32
    return %c0_i32, %c0_i32_0 : i32, i32
  }
  func.func @transform_6(%arg0: i32) -> (i32, i32) {
    %c0_i32 = arith.constant 0 : i32
    %c0_i32_0 = arith.constant 0 : i32
    %c0_i32_1 = arith.constant 0 : i32
    return %c0_i32, %c0_i32_0 : i32, i32
  }
  func.func @transform_7(%arg0: i32) -> (i32, i32) {
    %c0_i32 = arith.constant 0 : i32
    %c0_i32_0 = arith.constant 0 : i32
    return %arg0, %c0_i32 : i32, i32
  }
}

</mosaic_0001>

<bundles_post_ra>
// kernel: tpu_custom_call.1
= control target key start
LH: loop header
LB: loop body
LE: loop exit
PB: predicated region body
PF: predicated region fallthrough
CT: control target
= control target key end

     0   :  { %vm50_vm0 = vcmask 1041408   ;;  %s477_s0 = inlined_call_operand.vmem [shape: f32[8,20], index: 0, kind: input, shape index: {}]   ;;  %s478_s1 = inlined_call_operand.vmem [shape: bf16[20,128], index: 1, kind: input, shape index: {}]   ;;  %s479_s2 = inlined_call_operand.vmem [shape: f32[1,128], index: 2, kind: input, shape index: {}]   ;;  %s480_s3 = inlined_call_operand.vmem [shape: bf16[128,128], index: 3, kind: input, shape index: {}]   ;;  %s481_s4 = inlined_call_operand.vmem [shape: f32[1,128], index: 4, kind: input, shape index: {}]   ;;  %s482_s5 = inlined_call_operand.vmem [shape: bf16[128,100], index: 5, kind: input, shape index: {}]   ;;  %s483_s6 = inlined_call_operand.vmem [shape: f32[1,100], index: 6, kind: input, shape index: {}]   ;;  %s484_s7 = inlined_call_operand.hbm [shape: f32[8,100], index: 7, kind: output, shape index: {}]  }
   0x1   :  { %v32_v0 = vld [vmem:[%s478_s1 + $0x8] sm:$0x3]  ;;  %v328_v2 = vld [vmem:[%s480_s3 + $0x38] sm:$0xff]  ;;  %v327_v4 = vld [vmem:[%s480_s3 + $0x30] sm:$0xff] }
   0x2   :  { %v42_v1 = vunpack.c.l.b16 %v32_v0  ;;  %137 = vmatpush.bf16.msra.mxu1 %v328_v2 }
   0x4   :  { %v44_v3 = vpack.c.b16 %v42_v1, %v42_v1 }
   0x5   :  { %12 = vsyncpa [#allocation3], 0  ;;  %v320_v6 = vld [vmem:[%s478_s1] sm:$0xff]  ;;  %v326_v8 = vld [vmem:[%s480_s3 + $0x28] sm:$0xff]  ;;  %vm46_vm1 = vcmask 162816   ;;  %s367_s16 = smov [#allocation2]  }
   0x6   :  { %v52_v5 = vsel %vm50_vm0, %v44_v3, 0  ;;  %v28_v7 = vld [vmem:[%s477_s0] sm:$0xff]  ;;  %138 = vmatpush.bf16.msra.mxu1 %v327_v4  ;;  %v324_v11 = vld [vmem:[%s480_s3 + $0x18] sm:$0xff]  ;;  %v323_v12 = vld [vmem:[%s480_s3 + $0x10] sm:$0xff]  ;;  %s240_s17 = sshll.u32 %s367_s16, 4  ;;  %vm233_vm2 = vcmask 818176   ;;  %s241_s17 = int_to_ptr.vmem [resolvable:$true] %s240_s17 }
   0x7   :  { %60 = vmatpush.bf16.msra.mxu0 %v52_v5  ;;  %v29_v9 = vpack.c.bf16 %v28_v7, %v28_v7  ;;  %v325_v10 = vld [vmem:[%s480_s3 + $0x20] sm:$0xff]  ;;  %v322_v13 = vld [vmem:[%s480_s3 + $0x8] sm:$0xff]  ;;  %v336_v15 = vld [vmem:[%s482_s5 + $0x38] sm:$0xff] }
   0x8   :  { %v321_v14 = vld [vmem:[%s480_s3] sm:$0xff]  ;;  %220 = vmatpush.bf16.msra.mxu2 %v336_v15  ;;  %v335_v16 = vld [vmem:[%s482_s5 + $0x30] sm:$0xff]  ;;  %v334_v17 = vld [vmem:[%s482_s5 + $0x28] sm:$0xff] }
   0x9   :  { %v333_v18 = vld [vmem:[%s482_s5 + $0x20] sm:$0xff]  ;;  %v332_v19 = vld [vmem:[%s482_s5 + $0x18] sm:$0xff]  ;;  %v331_v20 = vld [vmem:[%s482_s5 + $0x10] sm:$0xff] }
   0xa   :  { %139 = vmatpush.bf16.msra.mxu1 %v326_v8  ;;  %v338_v21 = vld [vmem:[%s479_s2] ss:$0 sm:$0xff]  ;;  %v330_v27 = vld [vmem:[%s482_s5 + $0x8] sm:$0xff] }
   0xb   :  { %61 = vmatpush.bf16.msra.mxu0 %v320_v6  ;;  %v329_v28 = vld [vmem:[%s482_s5] sm:$0xff]  ;;  %s242_s5 = sshll.u32 %s484_s7, 4  ;;  %s243_s5 = int_to_ptr.hbm [resolvable:$true] %s242_s5 }
   0xc   :  { %221 = vmatpush.bf16.msra.mxu2 %v335_v16  ;;  %v339_v29 = vld [vmem:[%s481_s4] ss:$0 sm:$0xff] }
   0xd   :  { %v340_v35 = vld [vmem:[%s483_s6] ss:$0 sm:$0xff] }
   0xe   :  { %255 = vmatmul.msk.bf16.vlgmr.msra.gmra.mxu0 %vm46_vm1, %v29_v9  ;;  %140 = vmatpush.bf16.msra.mxu1 %v325_v10 }
  0x10   :  { %222 = vmatpush.bf16.msra.mxu2 %v334_v17 }
  0x12   :  { %141 = vmatpush.bf16.msra.mxu1 %v324_v11 }
  0x14   :  { %223 = vmatpush.bf16.msra.mxu2 %v333_v18 }
  0x16   :  { %142 = vmatpush.bf16.msra.mxu1 %v323_v12 }
  0x18   :  { %224 = vmatpush.bf16.msra.mxu2 %v332_v19 }
  0x1a   :  { %143 = vmatpush.bf16.msra.mxu1 %v322_v13 }
  0x1c   :  { %225 = vmatpush.bf16.msra.mxu2 %v331_v20 }
  0x1e   :  { %144 = vmatpush.bf16.msra.mxu1 %v321_v14 }
  0x20   :  { %226 = vmatpush.bf16.msra.mxu2 %v330_v27 }
  0x24   :  { %227 = vmatpush.bf16.msra.mxu2 %v329_v28 }
  0x8b   :  { %v63_v22 = vpop.f32.mrf.mxu0 }
  0x8c   :  { %v64_v23 = vadd.f32 %v338_v21, %v63_v22 }
  0x8e   :  { %v67_v24 = vmax.f32 %v64_v23, 0.0 }
  0x90   :  { %v68_v25 = vpack.c.bf16 %v67_v24, %v67_v24 }
  0x92   :  { %145 = vmatmul.bf16.vlgmr.msra.gmra.mxu1 %v68_v25 }
  0x93   :  { %v65_v26 = vpop.f32.mrf.mxu0 }
 0x10f   :  { %v146_v30 = vpop.f32.mrf.mxu1 }
 0x110   :  { %v147_v31 = vadd.f32 %v339_v29, %v146_v30 }
 0x112   :  { %v150_v32 = vmax.f32 %v147_v31, 0.0 }
 0x114   :  { %v151_v33 = vpack.c.bf16 %v150_v32, %v150_v32 }
 0x116   :  { %228 = vmatmul.bf16.vlgmr.msra.gmra.mxu2 %v151_v33 }
 0x117   :  { %v148_v34 = vpop.f32.mrf.mxu1 }
 0x199   :  { %v229_v36 = vpop.f32.mrf.mxu2 }
 0x19a   :  { %v230_v37 = vadd.f32 %v340_v35, %v229_v36 }
 0x19c   :  { %234 = vst.msk [vmem:[#allocation2] sm:$0xff] %vm233_vm2, %v230_v37 }
 0x19d   :  { %245 = dma.vmem_to_hbm [thread:$0]  %s241_s17, 128, %s243_s5, [#allocation3]  }
 0x1a1   :  { %v231_v38 = vpop.f32.mrf.mxu2 }
 0x1a2   :  { %365 = dma.done.wait [#allocation3], 128  }
 0x1a3   :  { %366 = vsyncadd [#allocation3], 4294967168 }
 0x1a4   :  { %250 = vsyncpa [#allocation3], 1 }

</bundles_post_ra>
